<compile_context>
chip_gen: v7x
topology: tpu7x:2x2x1
jax: 0.10.0
libtpu: 0.0.40
codegen_flags: <defaults>
</compile_context>

<pallas_src>
import numpy as np
import jax
import jax.numpy as jnp
from jax import lax
from jax.experimental import pallas as pl
from jax.experimental.pallas import tpu as pltpu

B = 2          # batch
L0 = 16        # input sequence length
L1 = L0 // 2   # length after AvgPool1d(2)
PACK_W = 128   # lane width of the packed parameter array

# Packed-parameter row layout (every offset is a multiple of 8).
_LAYOUT = [("W1", 16), ("W2", 48), ("W3", 96), ("W4", 192), ("WFC", 64),
           ("POOL", 16), ("MEAN", 8),
           ("B1", 8), ("B2", 8), ("B3", 8), ("B4", 8), ("BFC", 8)]
ROW = {}
_off = 0
for _name, _rows in _LAYOUT:
    ROW[_name] = _off
    _off += _rows
PACK_ROWS = _off  # 480


# ---------------------------------------------------------------------------
# Kernel
# ---------------------------------------------------------------------------
def _shift_rows(h, d, L):
    """Row-shift the stacked (B*L, C) activation by d rows with zero fill,
    without leaking data across the per-batch blocks of L rows."""
    BL, C = h.shape
    if d == 0:
        return h
    zeros = jnp.zeros((abs(d), C), h.dtype)
    if d > 0:
        sh = jnp.concatenate([h[d:, :], zeros], axis=0)
    else:
        sh = jnp.concatenate([zeros, h[:BL + d, :]], axis=0)
    pos = lax.broadcasted_iota(jnp.int32, (BL, C), 0) % L
    ok = jnp.logical_and(pos + d >= 0, pos + d < L)
    return jnp.where(ok, sh, 0.0)


def cnn_kernel(x_ref, p_ref, out_ref):
    def conv_relu(h, L, K, cin, cout, w_name, b_name):
        pad = (K - 1) // 2
        # im2col along the lane axis -> one matmul per conv layer.
        hcol = jnp.concatenate([_shift_rows(h, k - pad, L) for k in range(K)],
                               axis=1)                              # (B*L, K*cin)
        w = p_ref[pl.ds(ROW[w_name], K * cin), pl.ds(0, cout)]      # (K*cin, cout)
        b = p_ref[pl.ds(ROW[b_name], 1), pl.ds(0, cout)]            # (1, cout)
        y = jnp.dot(hcol, w, preferred_element_type=jnp.float32) + b
        return jnp.maximum(y, 0.0)

    x = x_ref[...]                                                  # (B*L0, 2)
    h = conv_relu(x, L0, 5, 2, 16, "W1", "B1")                      # (32, 16)
    h = conv_relu(h, L0, 3, 16, 32, "W2", "B2")                     # (32, 32)

    pool = p_ref[pl.ds(ROW["POOL"], B * L1), pl.ds(0, B * L0)]      # (16, 32)
    h = jnp.dot(pool, h, preferred_element_type=jnp.float32)        # AvgPool1d(2)

    h = conv_relu(h, L1, 3, 32, 64, "W3", "B3")                     # (16, 64)
    h = conv_relu(h, L1, 3, 64, 64, "W4", "B4")                     # (16, 64)

    mean = p_ref[pl.ds(ROW["MEAN"], B), pl.ds(0, B * L1)]           # (2, 16)
    feat = jnp.dot(mean, h, preferred_element_type=jnp.float32)     # (B, 64)

    # TODO(synk): Dropout(0.3) is identity at inference; training-mode stochastic mask not implemented.
    wfc = p_ref[pl.ds(ROW["WFC"], 64), pl.ds(0, 2)]                 # (64, 2)
    bfc = p_ref[pl.ds(ROW["BFC"], 1), pl.ds(0, 2)]                  # (1, 2)
    out_ref[...] = jnp.dot(feat, wfc, preferred_element_type=jnp.float32) + bfc


# ---------------------------------------------------------------------------
# Host-side packing & wrapper
# ---------------------------------------------------------------------------
def _pad_block(a, rows):
    a = jnp.asarray(a, jnp.float32)
    return jnp.pad(a, ((0, rows - a.shape[0]), (0, PACK_W - a.shape[1])))


def pack_params(params):
    (w1, b1, w2, b2, w3, b3, w4, b4, wfc, bfc) = params

    def conv_mat(w):                        # (Cout, Cin, K) -> (K*Cin, Cout)
        cout, cin, k = w.shape
        return jnp.transpose(w, (2, 1, 0)).reshape(k * cin, cout)

    pool = np.zeros((B * L1, B * L0), np.float32)     # AvgPool1d(2), stacked batch
    for i in range(B * L1):
        pool[i, 2 * i] = 0.5
        pool[i, 2 * i + 1] = 0.5
    mean = np.zeros((B, B * L1), np.float32)          # AdaptiveAvgPool1d(1), per batch block
    for b in range(B):
        mean[b, b * L1:(b + 1) * L1] = 1.0 / L1

    blocks = {"W1": conv_mat(w1), "W2": conv_mat(w2), "W3": conv_mat(w3),
              "W4": conv_mat(w4), "WFC": wfc.T,
              "POOL": jnp.asarray(pool), "MEAN": jnp.asarray(mean),
              "B1": b1.reshape(1, -1), "B2": b2.reshape(1, -1),
              "B3": b3.reshape(1, -1), "B4": b4.reshape(1, -1),
              "BFC": bfc.reshape(1, -1)}
    return jnp.concatenate([_pad_block(blocks[name], rows)
                            for name, rows in _LAYOUT], axis=0)     # (480, 128)


def cnn_forward(x_ncl, params):
    """x_ncl: (B, 2, L0) float32 (PyTorch NCL layout). Returns (B, 2) logits."""
    x_st = jnp.transpose(x_ncl, (0, 2, 1)).astype(jnp.float32).reshape(B * L0, 2)
    packed = pack_params(params)
    return pl.pallas_call(
        cnn_kernel,
        out_shape=jax.ShapeDtypeStruct((B, 2), jnp.float32),
        in_specs=[pl.BlockSpec(memory_space=pltpu.MemorySpace.VMEM),
                  pl.BlockSpec(memory_space=pltpu.MemorySpace.VMEM)],
        out_specs=pl.BlockSpec(memory_space=pltpu.MemorySpace.VMEM),
    )(x_st, packed)


# ---------------------------------------------------------------------------
# Pure-JAX reference (for correctness check)
# ---------------------------------------------------------------------------
def conv1d_ref(x, w, b, pad):
    y = lax.conv_general_dilated(
        x, w, window_strides=(1,), padding=[(pad, pad)],
        dimension_numbers=("NCH", "OIH", "NCH"))
    return y + b[None, :, None]


def ref_forward(x, params):
    (w1, b1, w2, b2, w3, b3, w4, b4, wfc, bfc) = params
    h = jax.nn.relu(conv1d_ref(x, w1, b1, 2))
    h = jax.nn.relu(conv1d_ref(h, w2, b2, 1))
    bb, cc, ll = h.shape
    h = h.reshape(bb, cc, ll // 2, 2).mean(-1)
    h = jax.nn.relu(conv1d_ref(h, w3, b3, 1))
    h = jax.nn.relu(conv1d_ref(h, w4, b4, 1))
    feat = h.mean(-1)                       # (B, 64)
    return feat @ wfc.T + bfc[None, :]      # Dropout is identity in eval


# ---------------------------------------------------------------------------
if __name__ == "__main__":
    keys = jax.random.split(jax.random.PRNGKey(0), 11)
    f32 = jnp.float32
    w1 = 0.1 * jax.random.normal(keys[0], (16, 2, 5), f32)
    b1 = 0.1 * jax.random.normal(keys[1], (16,), f32)
    w2 = 0.1 * jax.random.normal(keys[2], (32, 16, 3), f32)
    b2 = 0.1 * jax.random.normal(keys[3], (32,), f32)
    w3 = 0.1 * jax.random.normal(keys[4], (64, 32, 3), f32)
    b3 = 0.1 * jax.random.normal(keys[5], (64,), f32)
    w4 = 0.1 * jax.random.normal(keys[6], (64, 64, 3), f32)
    b4 = 0.1 * jax.random.normal(keys[7], (64,), f32)
    wfc = 0.1 * jax.random.normal(keys[8], (2, 64), f32)
    bfc = 0.1 * jax.random.normal(keys[9], (2,), f32)
    params = (w1, b1, w2, b2, w3, b3, w4, b4, wfc, bfc)

    x = jax.random.normal(keys[10], (B, 2, L0), f32)   # (batch, channels, length)

    out = jax.block_until_ready(cnn_forward(x, params))
    ref = jax.block_until_ready(ref_forward(x, params))
    assert out.shape == (B, 2)
    np.testing.assert_allclose(np.asarray(out), np.asarray(ref), rtol=1e-2, atol=1e-2)

    print("KERNEL_OK")
</pallas_src>

<mosaic_0001>
module attributes {stable_mosaic.version = 11 : i64} {
  func.func @cnn_kernel(%arg0: memref<32x2xf32, #tpu.memory_space<vmem>>, %arg1: memref<480x128xf32, #tpu.memory_space<vmem>>, %arg2: memref<2x2xf32, #tpu.memory_space<vmem>>) attributes {dimension_semantics = [], scalar_prefetch = 0 : i64, scratch_operands = 0 : i64, tpu.core_type = #tpu.core_type<tc>} {
    %c0 = arith.constant 0 : index
    %c0_0 = arith.constant 0 : index
    %0 = vector.load %arg0[%c0, %c0_0] : memref<32x2xf32, #tpu.memory_space<vmem>>, vector<32x2xf32>
    %cst = arith.constant 0.000000e+00 : f32
    %1 = vector.broadcast %cst : f32 to vector<2x2xf32>
    %2 = vector.extract_strided_slice %0 {offsets = [0, 0], sizes = [30, 2], strides = [1, 1]} : vector<32x2xf32> to vector<30x2xf32>
    %3 = tpu.concatenate %1, %2 in 0 : vector<2x2xf32>, vector<30x2xf32> -> vector<32x2xf32>
    %4 = tpu.iota {dimensions = array<i32: 0>} : vector<32x2xi32>
    %c16_i32 = arith.constant 16 : i32
    %c0_i32 = arith.constant 0 : i32
    %5 = arith.cmpi eq, %c16_i32, %c0_i32 : i32
    %c1_i32 = arith.constant 1 : i32
    %6 = arith.select %5, %c1_i32, %c16_i32 : i32
    %7 = vector.broadcast %6 : i32 to vector<32x2xi32>
    %8 = arith.remsi %4, %7 : vector<32x2xi32>
    %c0_i32_1 = arith.constant 0 : i32
    %9 = vector.broadcast %c0_i32_1 : i32 to vector<32x2xi32>
    %10 = arith.cmpi ne, %8, %9 : vector<32x2xi32>
    %c0_i32_2 = arith.constant 0 : i32
    %11 = vector.broadcast %c0_i32_2 : i32 to vector<32x2xi32>
    %12 = arith.cmpi slt, %8, %11 : vector<32x2xi32>
    %c0_i32_3 = arith.constant 0 : i32
    %13 = arith.cmpi slt, %6, %c0_i32_3 : i32
    %14 = vector.broadcast %13 : i1 to vector<32x2xi1>
    %15 = vector.broadcast %14 : vector<32x2xi1> to vector<32x2xi1>
    %16 = arith.xori %12, %15 : vector<32x2xi1>
    %17 = arith.andi %16, %10 : vector<32x2xi1>
    %18 = vector.broadcast %6 : i32 to vector<32x2xi32>
    %19 = arith.addi %8, %18 : vector<32x2xi32>
    %20 = arith.select %17, %19, %8 : vector<32x2xi1>, vector<32x2xi32>
    %c-2_i32 = arith.constant -2 : i32
    %21 = vector.broadcast %c-2_i32 : i32 to vector<32x2xi32>
    %22 = arith.addi %20, %21 : vector<32x2xi32>
    %c0_i32_4 = arith.constant 0 : i32
    %23 = vector.broadcast %c0_i32_4 : i32 to vector<32x2xi32>
    %24 = arith.cmpi sge, %22, %23 : vector<32x2xi32>
    %c-2_i32_5 = arith.constant -2 : i32
    %25 = vector.broadcast %c-2_i32_5 : i32 to vector<32x2xi32>
    %26 = arith.addi %20, %25 : vector<32x2xi32>
    %c16_i32_6 = arith.constant 16 : i32
    %27 = vector.broadcast %c16_i32_6 : i32 to vector<32x2xi32>
    %28 = arith.cmpi slt, %26, %27 : vector<32x2xi32>
    %29 = arith.andi %24, %28 : vector<32x2xi1>
    %cst_7 = arith.constant 0.000000e+00 : f32
    %30 = vector.broadcast %cst_7 : f32 to vector<32x2xf32>
    %31 = arith.select %29, %3, %30 : vector<32x2xi1>, vector<32x2xf32>
    %cst_8 = arith.constant 0.000000e+00 : f32
    %32 = vector.broadcast %cst_8 : f32 to vector<1x2xf32>
    %33 = vector.extract_strided_slice %0 {offsets = [0, 0], sizes = [31, 2], strides = [1, 1]} : vector<32x2xf32> to vector<31x2xf32>
    %34 = tpu.concatenate %32, %33 in 0 : vector<1x2xf32>, vector<31x2xf32> -> vector<32x2xf32>
    %35 = tpu.iota {dimensions = array<i32: 0>} : vector<32x2xi32>
    %c16_i32_9 = arith.constant 16 : i32
    %c0_i32_10 = arith.constant 0 : i32
    %36 = arith.cmpi eq, %c16_i32_9, %c0_i32_10 : i32
    %c1_i32_11 = arith.constant 1 : i32
    %37 = arith.select %36, %c1_i32_11, %c16_i32_9 : i32
    %38 = vector.broadcast %37 : i32 to vector<32x2xi32>
    %39 = arith.remsi %35, %38 : vector<32x2xi32>
    %c0_i32_12 = arith.constant 0 : i32
    %40 = vector.broadcast %c0_i32_12 : i32 to vector<32x2xi32>
    %41 = arith.cmpi ne, %39, %40 : vector<32x2xi32>
    %c0_i32_13 = arith.constant 0 : i32
    %42 = vector.broadcast %c0_i32_13 : i32 to vector<32x2xi32>
    %43 = arith.cmpi slt, %39, %42 : vector<32x2xi32>
    %c0_i32_14 = arith.constant 0 : i32
    %44 = arith.cmpi slt, %37, %c0_i32_14 : i32
    %45 = vector.broadcast %44 : i1 to vector<32x2xi1>
    %46 = vector.broadcast %45 : vector<32x2xi1> to vector<32x2xi1>
    %47 = arith.xori %43, %46 : vector<32x2xi1>
    %48 = arith.andi %47, %41 : vector<32x2xi1>
    %49 = vector.broadcast %37 : i32 to vector<32x2xi32>
    %50 = arith.addi %39, %49 : vector<32x2xi32>
    %51 = arith.select %48, %50, %39 : vector<32x2xi1>, vector<32x2xi32>
    %c-1_i32 = arith.constant -1 : i32
    %52 = vector.broadcast %c-1_i32 : i32 to vector<32x2xi32>
    %53 = arith.addi %51, %52 : vector<32x2xi32>
    %c0_i32_15 = arith.constant 0 : i32
    %54 = vector.broadcast %c0_i32_15 : i32 to vector<32x2xi32>
    %55 = arith.cmpi sge, %53, %54 : vector<32x2xi32>
    %c-1_i32_16 = arith.constant -1 : i32
    %56 = vector.broadcast %c-1_i32_16 : i32 to vector<32x2xi32>
    %57 = arith.addi %51, %56 : vector<32x2xi32>
    %c16_i32_17 = arith.constant 16 : i32
    %58 = vector.broadcast %c16_i32_17 : i32 to vector<32x2xi32>
    %59 = arith.cmpi slt, %57, %58 : vector<32x2xi32>
    %60 = arith.andi %55, %59 : vector<32x2xi1>
    %cst_18 = arith.constant 0.000000e+00 : f32
    %61 = vector.broadcast %cst_18 : f32 to vector<32x2xf32>
    %62 = arith.select %60, %34, %61 : vector<32x2xi1>, vector<32x2xf32>
    %cst_19 = arith.constant 0.000000e+00 : f32
    %63 = vector.broadcast %cst_19 : f32 to vector<1x2xf32>
    %64 = vector.extract_strided_slice %0 {offsets = [1, 0], sizes = [31, 2], strides = [1, 1]} : vector<32x2xf32> to vector<31x2xf32>
    %65 = tpu.concatenate %64, %63 in 0 : vector<31x2xf32>, vector<1x2xf32> -> vector<32x2xf32>
    %66 = tpu.iota {dimensions = array<i32: 0>} : vector<32x2xi32>
    %c16_i32_20 = arith.constant 16 : i32
    %c0_i32_21 = arith.constant 0 : i32
    %67 = arith.cmpi eq, %c16_i32_20, %c0_i32_21 : i32
    %c1_i32_22 = arith.constant 1 : i32
    %68 = arith.select %67, %c1_i32_22, %c16_i32_20 : i32
    %69 = vector.broadcast %68 : i32 to vector<32x2xi32>
    %70 = arith.remsi %66, %69 : vector<32x2xi32>
    %c0_i32_23 = arith.constant 0 : i32
    %71 = vector.broadcast %c0_i32_23 : i32 to vector<32x2xi32>
    %72 = arith.cmpi ne, %70, %71 : vector<32x2xi32>
    %c0_i32_24 = arith.constant 0 : i32
    %73 = vector.broadcast %c0_i32_24 : i32 to vector<32x2xi32>
    %74 = arith.cmpi slt, %70, %73 : vector<32x2xi32>
    %c0_i32_25 = arith.constant 0 : i32
    %75 = arith.cmpi slt, %68, %c0_i32_25 : i32
    %76 = vector.broadcast %75 : i1 to vector<32x2xi1>
    %77 = vector.broadcast %76 : vector<32x2xi1> to vector<32x2xi1>
    %78 = arith.xori %74, %77 : vector<32x2xi1>
    %79 = arith.andi %78, %72 : vector<32x2xi1>
    %80 = vector.broadcast %68 : i32 to vector<32x2xi32>
    %81 = arith.addi %70, %80 : vector<32x2xi32>
    %82 = arith.select %79, %81, %70 : vector<32x2xi1>, vector<32x2xi32>
    %c1_i32_26 = arith.constant 1 : i32
    %83 = vector.broadcast %c1_i32_26 : i32 to vector<32x2xi32>
    %84 = arith.addi %82, %83 : vector<32x2xi32>
    %c0_i32_27 = arith.constant 0 : i32
    %85 = vector.broadcast %c0_i32_27 : i32 to vector<32x2xi32>
    %86 = arith.cmpi sge, %84, %85 : vector<32x2xi32>
    %c1_i32_28 = arith.constant 1 : i32
    %87 = vector.broadcast %c1_i32_28 : i32 to vector<32x2xi32>
    %88 = arith.addi %82, %87 : vector<32x2xi32>
    %c16_i32_29 = arith.constant 16 : i32
    %89 = vector.broadcast %c16_i32_29 : i32 to vector<32x2xi32>
    %90 = arith.cmpi slt, %88, %89 : vector<32x2xi32>
    %91 = arith.andi %86, %90 : vector<32x2xi1>
    %cst_30 = arith.constant 0.000000e+00 : f32
    %92 = vector.broadcast %cst_30 : f32 to vector<32x2xf32>
    %93 = arith.select %91, %65, %92 : vector<32x2xi1>, vector<32x2xf32>
    %cst_31 = arith.constant 0.000000e+00 : f32
    %94 = vector.broadcast %cst_31 : f32 to vector<2x2xf32>
    %95 = vector.extract_strided_slice %0 {offsets = [2, 0], sizes = [30, 2], strides = [1, 1]} : vector<32x2xf32> to vector<30x2xf32>
    %96 = tpu.concatenate %95, %94 in 0 : vector<30x2xf32>, vector<2x2xf32> -> vector<32x2xf32>
    %97 = tpu.iota {dimensions = array<i32: 0>} : vector<32x2xi32>
    %c16_i32_32 = arith.constant 16 : i32
    %c0_i32_33 = arith.constant 0 : i32
    %98 = arith.cmpi eq, %c16_i32_32, %c0_i32_33 : i32
    %c1_i32_34 = arith.constant 1 : i32
    %99 = arith.select %98, %c1_i32_34, %c16_i32_32 : i32
    %100 = vector.broadcast %99 : i32 to vector<32x2xi32>
    %101 = arith.remsi %97, %100 : vector<32x2xi32>
    %c0_i32_35 = arith.constant 0 : i32
    %102 = vector.broadcast %c0_i32_35 : i32 to vector<32x2xi32>
    %103 = arith.cmpi ne, %101, %102 : vector<32x2xi32>
    %c0_i32_36 = arith.constant 0 : i32
    %104 = vector.broadcast %c0_i32_36 : i32 to vector<32x2xi32>
    %105 = arith.cmpi slt, %101, %104 : vector<32x2xi32>
    %c0_i32_37 = arith.constant 0 : i32
    %106 = arith.cmpi slt, %99, %c0_i32_37 : i32
    %107 = vector.broadcast %106 : i1 to vector<32x2xi1>
    %108 = vector.broadcast %107 : vector<32x2xi1> to vector<32x2xi1>
    %109 = arith.xori %105, %108 : vector<32x2xi1>
    %110 = arith.andi %109, %103 : vector<32x2xi1>
    %111 = vector.broadcast %99 : i32 to vector<32x2xi32>
    %112 = arith.addi %101, %111 : vector<32x2xi32>
    %113 = arith.select %110, %112, %101 : vector<32x2xi1>, vector<32x2xi32>
    %c2_i32 = arith.constant 2 : i32
    %114 = vector.broadcast %c2_i32 : i32 to vector<32x2xi32>
    %115 = arith.addi %113, %114 : vector<32x2xi32>
    %c0_i32_38 = arith.constant 0 : i32
    %116 = vector.broadcast %c0_i32_38 : i32 to vector<32x2xi32>
    %117 = arith.cmpi sge, %115, %116 : vector<32x2xi32>
    %c2_i32_39 = arith.constant 2 : i32
    %118 = vector.broadcast %c2_i32_39 : i32 to vector<32x2xi32>
    %119 = arith.addi %113, %118 : vector<32x2xi32>
    %c16_i32_40 = arith.constant 16 : i32
    %120 = vector.broadcast %c16_i32_40 : i32 to vector<32x2xi32>
    %121 = arith.cmpi slt, %119, %120 : vector<32x2xi32>
    %122 = arith.andi %117, %121 : vector<32x2xi1>
    %cst_41 = arith.constant 0.000000e+00 : f32
    %123 = vector.broadcast %cst_41 : f32 to vector<32x2xf32>
    %124 = arith.select %122, %96, %123 : vector<32x2xi1>, vector<32x2xf32>
    %125 = tpu.concatenate %31, %62, %0, %93, %124 in 1 : vector<32x2xf32>, vector<32x2xf32>, vector<32x2xf32>, vector<32x2xf32>, vector<32x2xf32> -> vector<32x10xf32>
    %c0_42 = arith.constant 0 : index
    %c0_43 = arith.constant 0 : index
    %126 = vector.load %arg1[%c0_42, %c0_43] : memref<480x128xf32, #tpu.memory_space<vmem>>, vector<10x16xf32>
    %c440 = arith.constant 440 : index
    %c0_44 = arith.constant 0 : index
    %127 = vector.load %arg1[%c440, %c0_44] : memref<480x128xf32, #tpu.memory_space<vmem>>, vector<1x16xf32>
    %cst_45 = arith.constant dense<0.000000e+00> : vector<32x16xf32>
    %128 = tpu.matmul %125, %126, %cst_45 {dimension_numbers = #tpu.dot_dimension_numbers<[1], [0], [0], [1], [0, 0, 1, 1], [], []>} : vector<32x10xf32>, vector<10x16xf32>, vector<32x16xf32> -> vector<32x16xf32>
    %129 = vector.broadcast %127 : vector<1x16xf32> to vector<32x16xf32>
    %130 = arith.addf %128, %129 : vector<32x16xf32>
    %cst_46 = arith.constant 0.000000e+00 : f32
    %131 = vector.broadcast %cst_46 : f32 to vector<32x16xf32>
    %132 = arith.maximumf %130, %131 : vector<32x16xf32>
    %cst_47 = arith.constant 0.000000e+00 : f32
    %133 = vector.broadcast %cst_47 : f32 to vector<1x16xf32>
    %134 = vector.extract_strided_slice %132 {offsets = [0, 0], sizes = [31, 16], strides = [1, 1]} : vector<32x16xf32> to vector<31x16xf32>
    %135 = tpu.concatenate %133, %134 in 0 : vector<1x16xf32>, vector<31x16xf32> -> vector<32x16xf32>
    %136 = tpu.iota {dimensions = array<i32: 0>} : vector<32x16xi32>
    %c16_i32_48 = arith.constant 16 : i32
    %c0_i32_49 = arith.constant 0 : i32
    %137 = arith.cmpi eq, %c16_i32_48, %c0_i32_49 : i32
    %c1_i32_50 = arith.constant 1 : i32
    %138 = arith.select %137, %c1_i32_50, %c16_i32_48 : i32
    %139 = vector.broadcast %138 : i32 to vector<32x16xi32>
    %140 = arith.remsi %136, %139 : vector<32x16xi32>
    %c0_i32_51 = arith.constant 0 : i32
    %141 = vector.broadcast %c0_i32_51 : i32 to vector<32x16xi32>
    %142 = arith.cmpi ne, %140, %141 : vector<32x16xi32>
    %c0_i32_52 = arith.constant 0 : i32
    %143 = vector.broadcast %c0_i32_52 : i32 to vector<32x16xi32>
    %144 = arith.cmpi slt, %140, %143 : vector<32x16xi32>
    %c0_i32_53 = arith.constant 0 : i32
    %145 = arith.cmpi slt, %138, %c0_i32_53 : i32
    %146 = vector.broadcast %145 : i1 to vector<32x16xi1>
    %147 = vector.broadcast %146 : vector<32x16xi1> to vector<32x16xi1>
    %148 = arith.xori %144, %147 : vector<32x16xi1>
    %149 = arith.andi %148, %142 : vector<32x16xi1>
    %150 = vector.broadcast %138 : i32 to vector<32x16xi32>
    %151 = arith.addi %140, %150 : vector<32x16xi32>
    %152 = arith.select %149, %151, %140 : vector<32x16xi1>, vector<32x16xi32>
    %c-1_i32_54 = arith.constant -1 : i32
    %153 = vector.broadcast %c-1_i32_54 : i32 to vector<32x16xi32>
    %154 = arith.addi %152, %153 : vector<32x16xi32>
    %c0_i32_55 = arith.constant 0 : i32
    %155 = vector.broadcast %c0_i32_55 : i32 to vector<32x16xi32>
    %156 = arith.cmpi sge, %154, %155 : vector<32x16xi32>
    %c-1_i32_56 = arith.constant -1 : i32
    %157 = vector.broadcast %c-1_i32_56 : i32 to vector<32x16xi32>
    %158 = arith.addi %152, %157 : vector<32x16xi32>
    %c16_i32_57 = arith.constant 16 : i32
    %159 = vector.broadcast %c16_i32_57 : i32 to vector<32x16xi32>
    %160 = arith.cmpi slt, %158, %159 : vector<32x16xi32>
    %161 = arith.andi %156, %160 : vector<32x16xi1>
    %cst_58 = arith.constant 0.000000e+00 : f32
    %162 = vector.broadcast %cst_58 : f32 to vector<32x16xf32>
    %163 = arith.select %161, %135, %162 : vector<32x16xi1>, vector<32x16xf32>
    %cst_59 = arith.constant 0.000000e+00 : f32
    %164 = vector.broadcast %cst_59 : f32 to vector<1x16xf32>
    %165 = vector.extract_strided_slice %132 {offsets = [1, 0], sizes = [31, 16], strides = [1, 1]} : vector<32x16xf32> to vector<31x16xf32>
    %166 = tpu.concatenate %165, %164 in 0 : vector<31x16xf32>, vector<1x16xf32> -> vector<32x16xf32>
    %167 = tpu.iota {dimensions = array<i32: 0>} : vector<32x16xi32>
    %c16_i32_60 = arith.constant 16 : i32
    %c0_i32_61 = arith.constant 0 : i32
    %168 = arith.cmpi eq, %c16_i32_60, %c0_i32_61 : i32
    %c1_i32_62 = arith.constant 1 : i32
    %169 = arith.select %168, %c1_i32_62, %c16_i32_60 : i32
    %170 = vector.broadcast %169 : i32 to vector<32x16xi32>
    %171 = arith.remsi %167, %170 : vector<32x16xi32>
    %c0_i32_63 = arith.constant 0 : i32
    %172 = vector.broadcast %c0_i32_63 : i32 to vector<32x16xi32>
    %173 = arith.cmpi ne, %171, %172 : vector<32x16xi32>
    %c0_i32_64 = arith.constant 0 : i32
    %174 = vector.broadcast %c0_i32_64 : i32 to vector<32x16xi32>
    %175 = arith.cmpi slt, %171, %174 : vector<32x16xi32>
    %c0_i32_65 = arith.constant 0 : i32
    %176 = arith.cmpi slt, %169, %c0_i32_65 : i32
    %177 = vector.broadcast %176 : i1 to vector<32x16xi1>
    %178 = vector.broadcast %177 : vector<32x16xi1> to vector<32x16xi1>
    %179 = arith.xori %175, %178 : vector<32x16xi1>
    %180 = arith.andi %179, %173 : vector<32x16xi1>
    %181 = vector.broadcast %169 : i32 to vector<32x16xi32>
    %182 = arith.addi %171, %181 : vector<32x16xi32>
    %183 = arith.select %180, %182, %171 : vector<32x16xi1>, vector<32x16xi32>
    %c1_i32_66 = arith.constant 1 : i32
    %184 = vector.broadcast %c1_i32_66 : i32 to vector<32x16xi32>
    %185 = arith.addi %183, %184 : vector<32x16xi32>
    %c0_i32_67 = arith.constant 0 : i32
    %186 = vector.broadcast %c0_i32_67 : i32 to vector<32x16xi32>
    %187 = arith.cmpi sge, %185, %186 : vector<32x16xi32>
    %c1_i32_68 = arith.constant 1 : i32
    %188 = vector.broadcast %c1_i32_68 : i32 to vector<32x16xi32>
    %189 = arith.addi %183, %188 : vector<32x16xi32>
    %c16_i32_69 = arith.constant 16 : i32
    %190 = vector.broadcast %c16_i32_69 : i32 to vector<32x16xi32>
    %191 = arith.cmpi slt, %189, %190 : vector<32x16xi32>
    %192 = arith.andi %187, %191 : vector<32x16xi1>
    %cst_70 = arith.constant 0.000000e+00 : f32
    %193 = vector.broadcast %cst_70 : f32 to vector<32x16xf32>
    %194 = arith.select %192, %166, %193 : vector<32x16xi1>, vector<32x16xf32>
    %195 = tpu.concatenate %163, %132, %194 in 1 : vector<32x16xf32>, vector<32x16xf32>, vector<32x16xf32> -> vector<32x48xf32>
    %c16 = arith.constant 16 : index
    %c0_71 = arith.constant 0 : index
    %196 = vector.load %arg1[%c16, %c0_71] : memref<480x128xf32, #tpu.memory_space<vmem>>, vector<48x32xf32>
    %c448 = arith.constant 448 : index
    %c0_72 = arith.constant 0 : index
    %197 = vector.load %arg1[%c448, %c0_72] : memref<480x128xf32, #tpu.memory_space<vmem>>, vector<1x32xf32>
    %cst_73 = arith.constant dense<0.000000e+00> : vector<32x32xf32>
    %198 = tpu.matmul %195, %196, %cst_73 {dimension_numbers = #tpu.dot_dimension_numbers<[1], [0], [0], [1], [0, 0, 1, 1], [], []>} : vector<32x48xf32>, vector<48x32xf32>, vector<32x32xf32> -> vector<32x32xf32>
    %199 = vector.broadcast %197 : vector<1x32xf32> to vector<32x32xf32>
    %200 = arith.addf %198, %199 : vector<32x32xf32>
    %cst_74 = arith.constant 0.000000e+00 : f32
    %201 = vector.broadcast %cst_74 : f32 to vector<32x32xf32>
    %202 = arith.maximumf %200, %201 : vector<32x32xf32>
    %c416 = arith.constant 416 : index
    %c0_75 = arith.constant 0 : index
    %203 = vector.load %arg1[%c416, %c0_75] : memref<480x128xf32, #tpu.memory_space<vmem>>, vector<16x32xf32>
    %cst_76 = arith.constant dense<0.000000e+00> : vector<16x32xf32>
    %204 = tpu.matmul %203, %202, %cst_76 {dimension_numbers = #tpu.dot_dimension_numbers<[1], [0], [0], [1], [0, 0, 1, 1], [], []>} : vector<16x32xf32>, vector<32x32xf32>, vector<16x32xf32> -> vector<16x32xf32>
    %cst_77 = arith.constant 0.000000e+00 : f32
    %205 = vector.broadcast %cst_77 : f32 to vector<1x32xf32>
    %206 = vector.extract_strided_slice %204 {offsets = [0, 0], sizes = [15, 32], strides = [1, 1]} : vector<16x32xf32> to vector<15x32xf32>
    %207 = tpu.concatenate %205, %206 in 0 : vector<1x32xf32>, vector<15x32xf32> -> vector<16x32xf32>
    %208 = tpu.iota {dimensions = array<i32: 0>} : vector<16x32xi32>
    %c8_i32 = arith.constant 8 : i32
    %c0_i32_78 = arith.constant 0 : i32
    %209 = arith.cmpi eq, %c8_i32, %c0_i32_78 : i32
    %c1_i32_79 = arith.constant 1 : i32
    %210 = arith.select %209, %c1_i32_79, %c8_i32 : i32
    %211 = vector.broadcast %210 : i32 to vector<16x32xi32>
    %212 = arith.remsi %208, %211 : vector<16x32xi32>
    %c0_i32_80 = arith.constant 0 : i32
    %213 = vector.broadcast %c0_i32_80 : i32 to vector<16x32xi32>
    %214 = arith.cmpi ne, %212, %213 : vector<16x32xi32>
    %c0_i32_81 = arith.constant 0 : i32
    %215 = vector.broadcast %c0_i32_81 : i32 to vector<16x32xi32>
    %216 = arith.cmpi slt, %212, %215 : vector<16x32xi32>
    %c0_i32_82 = arith.constant 0 : i32
    %217 = arith.cmpi slt, %210, %c0_i32_82 : i32
    %218 = vector.broadcast %217 : i1 to vector<16x32xi1>
    %219 = vector.broadcast %218 : vector<16x32xi1> to vector<16x32xi1>
    %220 = arith.xori %216, %219 : vector<16x32xi1>
    %221 = arith.andi %220, %214 : vector<16x32xi1>
    %222 = vector.broadcast %210 : i32 to vector<16x32xi32>
    %223 = arith.addi %212, %222 : vector<16x32xi32>
    %224 = arith.select %221, %223, %212 : vector<16x32xi1>, vector<16x32xi32>
    %c-1_i32_83 = arith.constant -1 : i32
    %225 = vector.broadcast %c-1_i32_83 : i32 to vector<16x32xi32>
    %226 = arith.addi %224, %225 : vector<16x32xi32>
    %c0_i32_84 = arith.constant 0 : i32
    %227 = vector.broadcast %c0_i32_84 : i32 to vector<16x32xi32>
    %228 = arith.cmpi sge, %226, %227 : vector<16x32xi32>
    %c-1_i32_85 = arith.constant -1 : i32
    %229 = vector.broadcast %c-1_i32_85 : i32 to vector<16x32xi32>
    %230 = arith.addi %224, %229 : vector<16x32xi32>
    %c8_i32_86 = arith.constant 8 : i32
    %231 = vector.broadcast %c8_i32_86 : i32 to vector<16x32xi32>
    %232 = arith.cmpi slt, %230, %231 : vector<16x32xi32>
    %233 = arith.andi %228, %232 : vector<16x32xi1>
    %cst_87 = arith.constant 0.000000e+00 : f32
    %234 = vector.broadcast %cst_87 : f32 to vector<16x32xf32>
    %235 = arith.select %233, %207, %234 : vector<16x32xi1>, vector<16x32xf32>
    %cst_88 = arith.constant 0.000000e+00 : f32
    %236 = vector.broadcast %cst_88 : f32 to vector<1x32xf32>
    %237 = vector.extract_strided_slice %204 {offsets = [1, 0], sizes = [15, 32], strides = [1, 1]} : vector<16x32xf32> to vector<15x32xf32>
    %238 = tpu.concatenate %237, %236 in 0 : vector<15x32xf32>, vector<1x32xf32> -> vector<16x32xf32>
    %239 = tpu.iota {dimensions = array<i32: 0>} : vector<16x32xi32>
    %c8_i32_89 = arith.constant 8 : i32
    %c0_i32_90 = arith.constant 0 : i32
    %240 = arith.cmpi eq, %c8_i32_89, %c0_i32_90 : i32
    %c1_i32_91 = arith.constant 1 : i32
    %241 = arith.select %240, %c1_i32_91, %c8_i32_89 : i32
    %242 = vector.broadcast %241 : i32 to vector<16x32xi32>
    %243 = arith.remsi %239, %242 : vector<16x32xi32>
    %c0_i32_92 = arith.constant 0 : i32
    %244 = vector.broadcast %c0_i32_92 : i32 to vector<16x32xi32>
    %245 = arith.cmpi ne, %243, %244 : vector<16x32xi32>
    %c0_i32_93 = arith.constant 0 : i32
    %246 = vector.broadcast %c0_i32_93 : i32 to vector<16x32xi32>
    %247 = arith.cmpi slt, %243, %246 : vector<16x32xi32>
    %c0_i32_94 = arith.constant 0 : i32
    %248 = arith.cmpi slt, %241, %c0_i32_94 : i32
    %249 = vector.broadcast %248 : i1 to vector<16x32xi1>
    %250 = vector.broadcast %249 : vector<16x32xi1> to vector<16x32xi1>
    %251 = arith.xori %247, %250 : vector<16x32xi1>
    %252 = arith.andi %251, %245 : vector<16x32xi1>
    %253 = vector.broadcast %241 : i32 to vector<16x32xi32>
    %254 = arith.addi %243, %253 : vector<16x32xi32>
    %255 = arith.select %252, %254, %243 : vector<16x32xi1>, vector<16x32xi32>
    %c1_i32_95 = arith.constant 1 : i32
    %256 = vector.broadcast %c1_i32_95 : i32 to vector<16x32xi32>
    %257 = arith.addi %255, %256 : vector<16x32xi32>
    %c0_i32_96 = arith.constant 0 : i32
    %258 = vector.broadcast %c0_i32_96 : i32 to vector<16x32xi32>
    %259 = arith.cmpi sge, %257, %258 : vector<16x32xi32>
    %c1_i32_97 = arith.constant 1 : i32
    %260 = vector.broadcast %c1_i32_97 : i32 to vector<16x32xi32>
    %261 = arith.addi %255, %260 : vector<16x32xi32>
    %c8_i32_98 = arith.constant 8 : i32
    %262 = vector.broadcast %c8_i32_98 : i32 to vector<16x32xi32>
    %263 = arith.cmpi slt, %261, %262 : vector<16x32xi32>
    %264 = arith.andi %259, %263 : vector<16x32xi1>
    %cst_99 = arith.constant 0.000000e+00 : f32
    %265 = vector.broadcast %cst_99 : f32 to vector<16x32xf32>
    %266 = arith.select %264, %238, %265 : vector<16x32xi1>, vector<16x32xf32>
    %267 = tpu.concatenate %235, %204, %266 in 1 : vector<16x32xf32>, vector<16x32xf32>, vector<16x32xf32> -> vector<16x96xf32>
    %c64 = arith.constant 64 : index
    %c0_100 = arith.constant 0 : index
    %268 = vector.load %arg1[%c64, %c0_100] : memref<480x128xf32, #tpu.memory_space<vmem>>, vector<96x64xf32>
    %c456 = arith.constant 456 : index
    %c0_101 = arith.constant 0 : index
    %269 = vector.load %arg1[%c456, %c0_101] : memref<480x128xf32, #tpu.memory_space<vmem>>, vector<1x64xf32>
    %cst_102 = arith.constant dense<0.000000e+00> : vector<16x64xf32>
    %270 = tpu.matmul %267, %268, %cst_102 {dimension_numbers = #tpu.dot_dimension_numbers<[1], [0], [0], [1], [0, 0, 1, 1], [], []>} : vector<16x96xf32>, vector<96x64xf32>, vector<16x64xf32> -> vector<16x64xf32>
    %271 = vector.broadcast %269 : vector<1x64xf32> to vector<16x64xf32>
    %272 = arith.addf %270, %271 : vector<16x64xf32>
    %cst_103 = arith.constant 0.000000e+00 : f32
    %273 = vector.broadcast %cst_103 : f32 to vector<16x64xf32>
    %274 = arith.maximumf %272, %273 : vector<16x64xf32>
    %cst_104 = arith.constant 0.000000e+00 : f32
    %275 = vector.broadcast %cst_104 : f32 to vector<1x64xf32>
    %276 = vector.extract_strided_slice %274 {offsets = [0, 0], sizes = [15, 64], strides = [1, 1]} : vector<16x64xf32> to vector<15x64xf32>
    %277 = tpu.concatenate %275, %276 in 0 : vector<1x64xf32>, vector<15x64xf32> -> vector<16x64xf32>
    %278 = tpu.iota {dimensions = array<i32: 0>} : vector<16x64xi32>
    %c8_i32_105 = arith.constant 8 : i32
    %c0_i32_106 = arith.constant 0 : i32
    %279 = arith.cmpi eq, %c8_i32_105, %c0_i32_106 : i32
    %c1_i32_107 = arith.constant 1 : i32
    %280 = arith.select %279, %c1_i32_107, %c8_i32_105 : i32
    %281 = vector.broadcast %280 : i32 to vector<16x64xi32>
    %282 = arith.remsi %278, %281 : vector<16x64xi32>
    %c0_i32_108 = arith.constant 0 : i32
    %283 = vector.broadcast %c0_i32_108 : i32 to vector<16x64xi32>
    %284 = arith.cmpi ne, %282, %283 : vector<16x64xi32>
    %c0_i32_109 = arith.constant 0 : i32
    %285 = vector.broadcast %c0_i32_109 : i32 to vector<16x64xi32>
    %286 = arith.cmpi slt, %282, %285 : vector<16x64xi32>
    %c0_i32_110 = arith.constant 0 : i32
    %287 = arith.cmpi slt, %280, %c0_i32_110 : i32
    %288 = vector.broadcast %287 : i1 to vector<16x64xi1>
    %289 = vector.broadcast %288 : vector<16x64xi1> to vector<16x64xi1>
    %290 = arith.xori %286, %289 : vector<16x64xi1>
    %291 = arith.andi %290, %284 : vector<16x64xi1>
    %292 = vector.broadcast %280 : i32 to vector<16x64xi32>
    %293 = arith.addi %282, %292 : vector<16x64xi32>
    %294 = arith.select %291, %293, %282 : vector<16x64xi1>, vector<16x64xi32>
    %c-1_i32_111 = arith.constant -1 : i32
    %295 = vector.broadcast %c-1_i32_111 : i32 to vector<16x64xi32>
    %296 = arith.addi %294, %295 : vector<16x64xi32>
    %c0_i32_112 = arith.constant 0 : i32
    %297 = vector.broadcast %c0_i32_112 : i32 to vector<16x64xi32>
    %298 = arith.cmpi sge, %296, %297 : vector<16x64xi32>
    %c-1_i32_113 = arith.constant -1 : i32
    %299 = vector.broadcast %c-1_i32_113 : i32 to vector<16x64xi32>
    %300 = arith.addi %294, %299 : vector<16x64xi32>
    %c8_i32_114 = arith.constant 8 : i32
    %301 = vector.broadcast %c8_i32_114 : i32 to vector<16x64xi32>
    %302 = arith.cmpi slt, %300, %301 : vector<16x64xi32>
    %303 = arith.andi %298, %302 : vector<16x64xi1>
    %cst_115 = arith.constant 0.000000e+00 : f32
    %304 = vector.broadcast %cst_115 : f32 to vector<16x64xf32>
    %305 = arith.select %303, %277, %304 : vector<16x64xi1>, vector<16x64xf32>
    %cst_116 = arith.constant 0.000000e+00 : f32
    %306 = vector.broadcast %cst_116 : f32 to vector<1x64xf32>
    %307 = vector.extract_strided_slice %274 {offsets = [1, 0], sizes = [15, 64], strides = [1, 1]} : vector<16x64xf32> to vector<15x64xf32>
    %308 = tpu.concatenate %307, %306 in 0 : vector<15x64xf32>, vector<1x64xf32> -> vector<16x64xf32>
    %309 = tpu.iota {dimensions = array<i32: 0>} : vector<16x64xi32>
    %c8_i32_117 = arith.constant 8 : i32
    %c0_i32_118 = arith.constant 0 : i32
    %310 = arith.cmpi eq, %c8_i32_117, %c0_i32_118 : i32
    %c1_i32_119 = arith.constant 1 : i32
    %311 = arith.select %310, %c1_i32_119, %c8_i32_117 : i32
    %312 = vector.broadcast %311 : i32 to vector<16x64xi32>
    %313 = arith.remsi %309, %312 : vector<16x64xi32>
    %c0_i32_120 = arith.constant 0 : i32
    %314 = vector.broadcast %c0_i32_120 : i32 to vector<16x64xi32>
    %315 = arith.cmpi ne, %313, %314 : vector<16x64xi32>
    %c0_i32_121 = arith.constant 0 : i32
    %316 = vector.broadcast %c0_i32_121 : i32 to vector<16x64xi32>
    %317 = arith.cmpi slt, %313, %316 : vector<16x64xi32>
    %c0_i32_122 = arith.constant 0 : i32
    %318 = arith.cmpi slt, %311, %c0_i32_122 : i32
    %319 = vector.broadcast %318 : i1 to vector<16x64xi1>
    %320 = vector.broadcast %319 : vector<16x64xi1> to vector<16x64xi1>
    %321 = arith.xori %317, %320 : vector<16x64xi1>
    %322 = arith.andi %321, %315 : vector<16x64xi1>
    %323 = vector.broadcast %311 : i32 to vector<16x64xi32>
    %324 = arith.addi %313, %323 : vector<16x64xi32>
    %325 = arith.select %322, %324, %313 : vector<16x64xi1>, vector<16x64xi32>
    %c1_i32_123 = arith.constant 1 : i32
    %326 = vector.broadcast %c1_i32_123 : i32 to vector<16x64xi32>
    %327 = arith.addi %325, %326 : vector<16x64xi32>
    %c0_i32_124 = arith.constant 0 : i32
    %328 = vector.broadcast %c0_i32_124 : i32 to vector<16x64xi32>
    %329 = arith.cmpi sge, %327, %328 : vector<16x64xi32>
    %c1_i32_125 = arith.constant 1 : i32
    %330 = vector.broadcast %c1_i32_125 : i32 to vector<16x64xi32>
    %331 = arith.addi %325, %330 : vector<16x64xi32>
    %c8_i32_126 = arith.constant 8 : i32
    %332 = vector.broadcast %c8_i32_126 : i32 to vector<16x64xi32>
    %333 = arith.cmpi slt, %331, %332 : vector<16x64xi32>
    %334 = arith.andi %329, %333 : vector<16x64xi1>
    %cst_127 = arith.constant 0.000000e+00 : f32
    %335 = vector.broadcast %cst_127 : f32 to vector<16x64xf32>
    %336 = arith.select %334, %308, %335 : vector<16x64xi1>, vector<16x64xf32>
    %337 = tpu.concatenate %305, %274, %336 in 1 : vector<16x64xf32>, vector<16x64xf32>, vector<16x64xf32> -> vector<16x192xf32>
    %c160 = arith.constant 160 : index
    %c0_128 = arith.constant 0 : index
    %338 = vector.load %arg1[%c160, %c0_128] : memref<480x128xf32, #tpu.memory_space<vmem>>, vector<192x64xf32>
    %c464 = arith.constant 464 : index
    %c0_129 = arith.constant 0 : index
    %339 = vector.load %arg1[%c464, %c0_129] : memref<480x128xf32, #tpu.memory_space<vmem>>, vector<1x64xf32>
    %cst_130 = arith.constant dense<0.000000e+00> : vector<16x64xf32>
    %340 = tpu.matmul %337, %338, %cst_130 {dimension_numbers = #tpu.dot_dimension_numbers<[1], [0], [0], [1], [0, 0, 1, 1], [], []>} : vector<16x192xf32>, vector<192x64xf32>, vector<16x64xf32> -> vector<16x64xf32>
    %341 = vector.broadcast %339 : vector<1x64xf32> to vector<16x64xf32>
    %342 = arith.addf %340, %341 : vector<16x64xf32>
    %cst_131 = arith.constant 0.000000e+00 : f32
    %343 = vector.broadcast %cst_131 : f32 to vector<16x64xf32>
    %344 = arith.maximumf %342, %343 : vector<16x64xf32>
    %c432 = arith.constant 432 : index
    %c0_132 = arith.constant 0 : index
    %345 = vector.load %arg1[%c432, %c0_132] : memref<480x128xf32, #tpu.memory_space<vmem>>, vector<2x16xf32>
    %cst_133 = arith.constant dense<0.000000e+00> : vector<2x64xf32>
    %346 = tpu.matmul %345, %344, %cst_133 {dimension_numbers = #tpu.dot_dimension_numbers<[1], [0], [0], [1], [0, 0, 1, 1], [], []>} : vector<2x16xf32>, vector<16x64xf32>, vector<2x64xf32> -> vector<2x64xf32>
    %c352 = arith.constant 352 : index
    %c0_134 = arith.constant 0 : index
    %347 = vector.load %arg1[%c352, %c0_134] : memref<480x128xf32, #tpu.memory_space<vmem>>, vector<64x2xf32>
    %c472 = arith.constant 472 : index
    %c0_135 = arith.constant 0 : index
    %348 = vector.load %arg1[%c472, %c0_135] : memref<480x128xf32, #tpu.memory_space<vmem>>, vector<1x2xf32>
    %cst_136 = arith.constant dense<0.000000e+00> : vector<2x2xf32>
    %349 = tpu.matmul %346, %347, %cst_136 {dimension_numbers = #tpu.dot_dimension_numbers<[1], [0], [0], [1], [0, 0, 1, 1], [], []>} : vector<2x64xf32>, vector<64x2xf32>, vector<2x2xf32> -> vector<2x2xf32>
    %350 = vector.broadcast %348 : vector<1x2xf32> to vector<2x2xf32>
    %351 = arith.addf %349, %350 : vector<2x2xf32>
    %c0_137 = arith.constant 0 : index
    %c0_138 = arith.constant 0 : index
    %352 = vector.load %arg2[%c0_137, %c0_138] : memref<2x2xf32, #tpu.memory_space<vmem>>, vector<2x2xf32>
    tpu.vector_store %arg2[%c0_137, %c0_138], %351 {strides = array<i32>} : memref<2x2xf32, #tpu.memory_space<vmem>>, vector<2x2xf32>,
    return
  }
}

</mosaic_0001>

<bundles_post_ra>
// kernel: tpu_custom_call.1
= control target key start
LH: loop header
LB: loop body
LE: loop exit
PB: predicated region body
PF: predicated region fallthrough
CT: control target
= control target key end

     0   :  { %7 = vsyncpa [#allocation3], 0  ;;  %s1772_s0 = inlined_call_operand.vmem [shape: f32[32,2], index: 0, kind: input, shape index: {}]   ;;  %s1773_s1 = inlined_call_operand.hbm [shape: f32[480,128], index: 1, kind: input, shape index: {}]   ;;  %s1774_s2 = inlined_call_operand.hbm [shape: f32[2,2], index: 2, kind: output, shape index: {}]  }
   0x1   :  { %8 = vsyncpa [#allocation4], 0  ;;  %s1499_s9 = smov [#allocation2]   ;;  %s1451_s13 = scalar_lea.hbm %s1773_s1, 7680 }
   0x2   :  { %s16_s10 = sshll.u32 %s1499_s9, 4  ;;  %p1452_p0 = scmp.ne.s32.totalorder %s1773_s1, %s1451_s13  ;;  %s17_s10 = int_to_ptr.vmem [resolvable:$true] %s16_s10 }
   0x3   :  { %p1455_p1 = scmp.lt.u32.totalorder %s1451_s13, %s1773_s1 }
   0x5   :  { %p1457_p2 = pnand %p1455_p1, %p1452_p0 }
   0x7   :  { %1460 = shalt.err (!%p1457_p2)
}
   0x8   :  { %s1461_s18 = scalar_lea.vmem %s17_s10, 7680  ;;  %p1466_p4 = scmp.lt.s32.totalorder %s17_s10, %s17_s10 }
   0x9   :  { %p1462_p3 = scmp.ne.s32.totalorder %s17_s10, %s1461_s18  ;;  %p1467_p5 = scmp.lt.s32.totalorder %s1461_s18, %s1461_s18 }
   0xb   :  { %p1468_p6 = por %p1467_p5, %p1466_p4 }
   0xd   :  { %p1469_p7 = pnand %p1468_p6, %p1462_p3 }
   0xf   :  { %1472 = shalt.err (!%p1469_p7)
}
  0x10   :  { %s1500_s19 = smov 128   ;;  %s1501_s20 = smov 8  }
  0x11   :  { %22 = dma.hbm_to_vmem [thread:$0]  %s1773_s1, 7680, %s17_s10, [#allocation3], %s1500_s19, %s1500_s19, %s1501_s20  }
  0x12   :  { %1495 = dma.done.wait [#allocation3], 7680  }
  0x13   :  { %1496 = vsyncadd [#allocation3], 4294959616  ;;  %v47_v0 = vlaneseq  ;;  %v26_v7 = vld [vmem:[%s1772_s0] sm:$0xff]  ;;  %v27_v8 = vld [vmem:[%s1772_s0 + $0x8] sm:$0xff]  ;;  %vm120_vm0 = vcmask 1040384   ;;  %vm153_vm1 = vcmask 1046528  }
  0x14   :  { %v1558_v9 = vld [vmem:[%s1772_s0 + $0x10] sm:$0xff]  ;;  %s1502_s28 = smov 4   ;;  %v121_v10 = vrot.slane %v26_v7, 7  ;;  %v122_v11 = vrot.slane %v27_v8, 7  ;;  %v154_v12 = vrot.slane %v26_v7, 1  ;;  %v155_v13 = vrot.slane %v27_v8, 1 }
  0x15   :  { %v1541_v1 = vshrl.u32 %v47_v0, 7  ;;  %235 = vrot.lane.b32.xlu1 %v26_v7, %s1502_s28  ;;  %v157_v14 = vrot.slane %v1558_v9, 1  ;;  %v124_v17 = vrot.slane %v1558_v9, 7  ;;  %s1503_s29 = smov 2   ;;  %v1578_v21 = vld [vmem:[%s1772_s0 + $0x18] sm:$0xff]  ;;  %vm186_vm3 = vcmask 1045504  }
  0x16   :  { %v123_v16 = vsel %vm120_vm0, %v121_v10, %v122_v11  ;;  %v156_v22 = vsel %vm153_vm1, %v154_v12, %v155_v13  ;;  %v187_v23 = vrot.slane %v26_v7, 2  ;;  %v188_v24 = vrot.slane %v27_v8, 2  ;;  %s1504_s0 = smov 6   ;;  %v299_v34 = vld [vmem:[#allocation2] sm:$0xff]  ;;  %v300_v35 = vld [vmem:[#allocation2 + $0x8] sm:$0x3] }
  0x17   :  { %v1544_v2 = vadd.s32 8, %v1541_v1  ;;  %v50_v3 = vadd.s32 16, %v1541_v1  ;;  %v56_v6 = vand.u32 15, %v1541_v1  ;;  %225 = vrot.lane.b32.xlu0 %v123_v16, %s1503_s29  ;;  %v158_v20 = vsel %vm153_vm1, %v155_v13, %v157_v14  ;;  %s1506_s4 = smov 16   ;;  %s1507_s5 = smov 32  }
  0x18   :  { %v125_v26 = vsel %vm120_vm0, %v122_v11, %v124_v17  ;;  %v132_v27 = vsel %vm120_vm0, 0.0, %v121_v10  ;;  %v51_v28 = vadd.s32 24, %v1541_v1  ;;  %v126_v29 = vrot.slane %v1578_v21, 7  ;;  %s1508_s6 = smov 64   ;;  %s1512_s7 = smov [#allocation5]  }
  0x19   :  { %v63_v4 = vand.u32 15, %v1544_v2  ;;  %v70_v5 = vand.u32 15, %v50_v3  ;;  %v1568_v19 = vadd.s32 4294967295, %v56_v6  ;;  %237 = vrot.lane.b32.xlu1 %v27_v8, %s1502_s28  ;;  %v190_v30 = vrot.slane %v1558_v9, 2  ;;  %s1165_s8 = sshll.u32 %s1512_s7, 4  ;;  %s1166_s8 = int_to_ptr.vmem [resolvable:$true] %s1165_s8 }
  0x1a   :  { %v100_v31 = vadd.s32 4294967294, %v56_v6  ;;  %v189_v32 = vsel %vm186_vm3, %v187_v23, %v188_v24  ;;  %vm34_vm6 = vcmask 1041408   ;;  %v36_v33 = vrot.slane %v27_v8, 6  ;;  %s1473_s9 = scalar_lea.vmem %s1166_s8, 32  ;;  %p1478_p9 = scmp.lt.s32.totalorder %s1166_s8, %s1166_s8 }
  0x1b   :  { %v1562_v15 = vadd.s32 1, %v63_v4  ;;  %v1566_v18 = vadd.s32 4294967295, %v70_v5  ;;  %vm137_vm5 = vcmp.ge.s32.totalorder %v1568_v19, 0  ;;  %251 = vrot.lane.b32.xlu0 %v156_v22, %s1504_s0  ;;  %v200_v38 = vadd.s32 2, %v63_v4  ;;  %p1474_p8 = scmp.ne.s32.totalorder %s1166_s8, %s1473_s9  ;;  %p1479_p10 = scmp.lt.s32.totalorder %s1473_s9, %s1473_s9 }
  0x1c   :  { %v149_v37 = vsel %vm137_vm5, %v132_v27, 0.0  ;;  %v77_v39 = vand.u32 15, %v51_v28  ;;  %v127_v40 = vsel %vm120_vm0, %v124_v17, %v126_v29  ;;  %v191_v41 = vsel %vm186_vm3, %v188_v24, %v190_v30 }
  0x1d   :  { %vm175_vm2 = vcmp.lt.s32.totalorder %v1562_v15, 16  ;;  %vm139_vm4 = vcmp.ge.s32.totalorder %v1566_v18, 0  ;;  %v35_v42 = vrot.slane %v26_v7, 6  ;;  %v38_v43 = vrot.slane %v1558_v9, 6  ;;  %p1480_p11 = por %p1479_p10, %p1478_p9 }
  0x1e   :  { %v183_v25 = vsel %vm175_vm2, %v158_v20, 0.0  ;;  %v151_v36 = vsel %vm139_vm4, %v125_v26, 0.0  ;;  %v102_v44 = vadd.s32 4294967294, %v70_v5  ;;  %vm104_vm7 = vcmp.ge.s32.totalorder %v100_v31, 0 }
  0x1f   :  { %253 = vrot.lane.b32.xlu1 %v183_v25, %s1504_s0  ;;  %267 = vrot.lane.b32.xlu0 %v189_v32, %s1501_s20  ;;  %v40_v45 = vrot.slane %v1578_v21, 6  ;;  %v1336_v46 = vpack.c.bf16 %v300_v35, %v299_v34  ;;  %v37_v47 = vsel %vm34_vm6, %v35_v42, %v36_v33  ;;  %v39_v48 = vsel %vm34_vm6, %v36_v33, %v38_v43  ;;  %p1481_p12 = pnand %p1480_p11, %p1474_p8 }
  0x20   :  { %v46_v49 = vsel %vm34_vm6, 0.0, %v35_v42  ;;  %vm208_vm8 = vcmp.lt.s32.totalorder %v200_v38, 16  ;;  %vm106_vm9 = vcmp.ge.s32.totalorder %v102_v44, 0  ;;  %vm1505_vm10 = vmmov 1   ;;  %v486_v38 = vld [vmem:[#allocation2 + $0x18] sm:$0xff]  ;;  %v488_v42 = vld [vmem:[#allocation2 + $0x28] sm:$0xff] }
  0x21   :  { %v116_v50 = vsel %vm104_vm7, %v46_v49, 0.0  ;;  %v41_v51 = vsel %vm34_vm6, %v38_v43, %v40_v45  ;;  %vm1337_vm11 = vmpackc.low %vm34_vm6, %vm1505_vm10  ;;  %v159_v52 = vrot.slane %v1578_v21, 1  ;;  %v1610_v53 = vadd.s32 1, %v77_v39 }
  0x22   :  { %v118_v54 = vsel %vm106_vm9, %v39_v48, 0.0  ;;  %1338 = vmatprep.subr.msk.bf16.mxu0 %vm1337_vm11, %v1336_v46  ;;  %v216_v55 = vsel %vm208_vm8, %v191_v41, 0.0  ;;  %v192_v57 = vrot.slane %v1578_v21, 2  ;;  %v202_v58 = vadd.s32 2, %v77_v39  ;;  %v487_v41 = vld [vmem:[#allocation2 + $0x20] sm:$0xff] }
  0x23   :  { %227 = vrot.lane.b32.xlu1 %v151_v36, %s1503_s29  ;;  %223 = vrot.lane.b32.xlu0 %v149_v37, %s1503_s29  ;;  %v165_v56 = vsel %vm153_vm1, %v159_v52, 0.0  ;;  %vm177_vm12 = vcmp.lt.s32.totalorder %v1610_v53, 16  ;;  %v160_v61 = vsel %vm153_vm1, %v157_v14, %v159_v52  ;;  %vm279_vm14 = vcmask 15360   ;;  %v485_v37 = vld [vmem:[#allocation2 + $0x10] sm:$0xff] }
  0x24   :  { %1341 = vmatpush3.bf16.msk.msra.mxu0 %vm1337_vm11, %v1336_v46  ;;  %v185_v59 = vsel %vm177_vm12, %v165_v56, 0.0  ;;  %v198_v60 = vsel %vm186_vm3, %v192_v57, 0.0  ;;  %vm210_vm13 = vcmp.lt.s32.totalorder %v202_v58, 16  ;;  %v193_v63 = vsel %vm186_vm3, %v190_v30, %v192_v57  ;;  %v489_v52 = vld [vmem:[#allocation2 + $0x30] sm:$0xff] }
  0x25   :  { %v218_v62 = vsel %vm210_vm13, %v198_v60, 0.0  ;;  %vm284_vm15 = vcmask 31744   ;;  %vm289_vm6 = vcmask 48128   ;;  %vm294_vm7 = vcmask 64512  }
  0x26   :  { %vm306_vm3 = vcmask 80896   ;;  %v1342_v39 = vpack.c.bf16 %v486_v38, %v485_v37  ;;  %v1346_v43 = vpack.c.bf16 %v488_v42, %v487_v41  ;;  %vm475_vm8 = vcmask 130048  }
  0x27   :  { %229 = vrot.lane.b32.xlu1 %v127_v40, %s1503_s29  ;;  %269 = vrot.lane.b32.xlu0 %v216_v55, %s1501_s20  ;;  %v1174_v40 = vld [vmem:[#allocation2 + $0x1b8] ss:$0 sm:$0xff]  ;;  %vm480_vm9 = vcmask 261120   ;;  %vm775_vm13 = vcmask 785408  }
  0x28   :  { %1343 = vmatprep.subr.bf16.mxu1 %v1342_v39 }
  0x29   :  { %1345 = vmatpush3.bf16.msra.mxu1 %v1342_v39 }
  0x2a   :  { %1347 = vmatprep.subr.bf16.mxu1 %v1346_v43 }
  0x2b   :  { %241 = vrot.lane.b32.xlu1 %v1578_v21, %s1502_s28  ;;  %239 = vrot.lane.b32.xlu0 %v1558_v9, %s1502_s28 }
  0x2d   :  { %1349 = vmatpush3.bf16.msra.mxu1 %v1346_v43 }
  0x2f   :  { %257 = vrot.lane.b32.xlu1 %v185_v59, %s1504_s0  ;;  %255 = vrot.lane.b32.xlu0 %v160_v61, %s1504_s0 }
  0x33   :  { %273 = vrot.lane.b32.xlu1 %v218_v62, %s1501_s20  ;;  %271 = vrot.lane.b32.xlu0 %v193_v63, %s1501_s20 }
  0x87   :  { %v236_v0 = vpop.permute.xlu1 %235 }
  0x89   :  { %v226_v3 = vpop.permute.xlu0 %225 }
  0x8a   :  { %v281_v9 = vsel %vm279_vm14, %v37_v47, %v226_v3 }
  0x8b   :  { %v238_v4 = vpop.permute.xlu1 %237 }
  0x8c   :  { %v286_v14 = vsel %vm284_vm15, %v281_v9, %v238_v4 }
  0x8d   :  { %v252_v5 = vpop.permute.xlu0 %251 }
  0x91   :  { %v254_v6 = vpop.permute.xlu1 %253  ;;  %v268_v7 = vpop.permute.xlu0 %267 }
  0x92   :  { %v291_v17 = vsel %vm289_vm6, %v286_v14, %v254_v6 }
  0x95   :  { %v228_v8 = vpop.permute.xlu1 %227  ;;  %v224_v10 = vpop.permute.xlu0 %223 }
  0x96   :  { %v280_v11 = vsel %vm279_vm14, %v116_v50, %v224_v10  ;;  %v282_v28 = vsel %vm279_vm14, %v118_v54, %v228_v8  ;;  %v490_v54 = vld [vmem:[#allocation2 + $0x38] sm:$0xff] }
  0x97   :  { %v285_v13 = vsel %vm284_vm15, %v280_v11, %v236_v0  ;;  %v1350_v57 = vpack.c.bf16 %v490_v54, %v489_v52  ;;  %v760_v52 = vld [vmem:[#allocation2 + $0x50] sm:$0xff] }
  0x98   :  { %v290_v16 = vsel %vm289_vm6, %v285_v13, %v252_v5 }
  0x99   :  { %v230_v12 = vpop.permute.xlu1 %229  ;;  %v270_v20 = vpop.permute.xlu0 %269  ;;  %v295_v21 = vsel %vm294_vm7, %v290_v16, %v268_v7  ;;  %1351 = vmatprep.subr.bf16.mxu1 %v1350_v57 }
  0x9a   :  { %v296_v22 = vsel %vm294_vm7, %v291_v17, %v270_v20  ;;  %1248 = vmatprep.mubr.msk.f32.mxu0 %vm306_vm3, %v295_v21  ;;  %v283_v27 = vsel %vm279_vm14, %v41_v51, %v230_v12  ;;  %1353 = vmatpush3.bf16.msra.mxu1 %v1350_v57  ;;  %v762_v57 = vld [vmem:[#allocation2 + $0x60] sm:$0xff] }
  0x9b   :  { %1249 = vmatmul.mubr.msk.f32.vlgmr.msra.gmra.mrb[0].mxu0 %vm306_vm3, %v296_v22 }
  0x9d   :  { %v242_v23 = vpop.permute.xlu1 %241  ;;  %v240_v24 = vpop.permute.xlu0 %239 }
  0x9e   :  { %v287_v29 = vsel %vm284_vm15, %v282_v28, %v240_v24  ;;  %v288_v31 = vsel %vm284_vm15, %v283_v27, %v242_v23 }
  0xa1   :  { %v258_v25 = vpop.permute.xlu1 %257  ;;  %v256_v26 = vpop.permute.xlu0 %255 }
  0xa2   :  { %v292_v32 = vsel %vm289_vm6, %v287_v29, %v256_v26  ;;  %v293_v34 = vsel %vm289_vm6, %v288_v31, %v258_v25 }
  0xa5   :  { %v274_v30 = vpop.permute.xlu1 %273  ;;  %v272_v33 = vpop.permute.xlu0 %271 }
  0xa6   :  { %v297_v35 = vsel %vm294_vm7, %v292_v32, %v272_v33  ;;  %v298_v36 = vsel %vm294_vm7, %v293_v34, %v274_v30  ;;  %v598_v33 = vld [vmem:[#allocation2 + $0x1a0] sm:$0xff] }
  0xa7   :  { %1251 = vmatprep.mubr.msk.f32.mxu0 %vm306_vm3, %v297_v35  ;;  %v1180_v34 = vld [vmem:[#allocation2 + $0x1c0] ss:$0 sm:$0xff] }
  0xa8   :  { %1252 = vmatmul.mubr.msk.f32.gmra.mrb[2].mxu0 %vm306_vm3, %v298_v36 }
  0xa9   :  { %1280 = vmatprep.mubr.msk.f32.mxu0 %vm480_vm9, %v598_v33  ;;  %v886_v33 = vld [vmem:[#allocation2 + $0xa8] sm:$0xff] }
 0x16e   :  { %v1250_v44 = vpop.f32.mrb[0].mxu0 }
 0x16f   :  { %v394_v45 = vadd.f32 %v1250_v44, %v1174_v40  ;;  %v388_v46 = vpop.f32.mrb[1].mxu0 }
 0x170   :  { %v389_v47 = vadd.f32 %v1174_v40, %v388_v46 }
 0x171   :  { %v408_v48 = vmax.f32 %v394_v45, 0.0 }
 0x172   :  { %v407_v49 = vmax.f32 %v389_v47, 0.0 }
 0x173   :  { %v416_v50 = vrot.slane %v408_v48, 7  ;;  %v432_v51 = vrot.slane %v408_v48, 1  ;;  %449 = vrot.lane.b32.xlu1 %v408_v48, %s1506_s4 }
 0x174   :  { %v415_v55 = vrot.slane %v407_v49, 7  ;;  %v431_v56 = vrot.slane %v407_v49, 1  ;;  %447 = vrot.lane.b32.xlu0 %v407_v49, %s1506_s4  ;;  %v599_v49 = vld [vmem:[#allocation2 + $0x1a8] sm:$0xff] }
 0x176   :  { %v433_v58 = vsel %vm153_vm1, %v431_v56, %v432_v51  ;;  %v417_v59 = vsel %vm120_vm0, %v415_v55, %v416_v50  ;;  %v426_v17 = vsel %vm120_vm0, 0.0, %v415_v55  ;;  %v761_v55 = vld [vmem:[#allocation2 + $0x58] sm:$0xff] }
 0x177   :  { %v427_v15 = vsel %vm137_vm5, %v426_v17, 0.0  ;;  %v1366_v56 = vpack.c.bf16 %v761_v55, %v760_v52  ;;  %v898_v52 = vld [vmem:[#allocation2 + $0x108] sm:$0xff]  ;;  %v899_v55 = vld [vmem:[#allocation2 + $0x110] sm:$0xff] }
 0x178   :  { %463 = vrot.lane.b32.xlu0 %v433_v58, %s1507_s5  ;;  %v763_v58 = vld [vmem:[#allocation2 + $0x68] sm:$0xff] }
 0x17b   :  { %v1253_v60 = vpop.f32.mrb[2].mxu0 }
 0x17c   :  { %v404_v61 = vadd.f32 %v1253_v60, %v1174_v40  ;;  %v398_v62 = vpop.f32.mrb[3].mxu0  ;;  %v764_v60 = vld [vmem:[#allocation2 + $0x70] sm:$0xff] }
 0x17d   :  { %v399_v63 = vadd.f32 %v1174_v40, %v398_v62 }
 0x17e   :  { %v410_v0 = vmax.f32 %v404_v61, 0.0  ;;  %v765_v61 = vld [vmem:[#allocation2 + $0x78] sm:$0xff] }
 0x17f   :  { %v409_v3 = vmax.f32 %v399_v63, 0.0  ;;  %v1374_v62 = vpack.c.bf16 %v765_v61, %v764_v60  ;;  %v766_v63 = vld [vmem:[#allocation2 + $0x80] sm:$0xff]  ;;  %v903_v61 = vld [vmem:[#allocation2 + $0x130] sm:$0xff] }
 0x180   :  { %v420_v4 = vrot.slane %v410_v0, 7  ;;  %v436_v5 = vrot.slane %v410_v0, 1  ;;  %453 = vrot.lane.b32.xlu1 %v410_v0, %s1506_s4  ;;  %v767_v0 = vld [vmem:[#allocation2 + $0x88] sm:$0xff] }
 0x181   :  { %v418_v6 = vrot.slane %v409_v3, 7  ;;  %v434_v7 = vrot.slane %v409_v3, 1  ;;  %451 = vrot.lane.b32.xlu0 %v409_v3, %s1506_s4  ;;  %v1378_v3 = vpack.c.bf16 %v767_v0, %v766_v63  ;;  %v905_v0 = vld [vmem:[#allocation2 + $0x140] sm:$0xff] }
 0x182   :  { %v442_v13 = vsel %vm153_vm1, %v436_v5, 0.0 }
 0x183   :  { %v435_v8 = vsel %vm153_vm1, %v432_v51, %v434_v7  ;;  %v437_v9 = vsel %vm153_vm1, %v434_v7, %v436_v5  ;;  %v421_v10 = vsel %vm120_vm0, %v418_v6, %v420_v4  ;;  %v419_v12 = vsel %vm120_vm0, %v416_v50, %v418_v6  ;;  %v758_v50 = vld [vmem:[#allocation2 + $0x40] sm:$0xff]  ;;  %v759_v51 = vld [vmem:[#allocation2 + $0x48] sm:$0xff]  ;;  %v768_v4 = vld [vmem:[#allocation2 + $0x90] sm:$0xff] }
 0x184   :  { %v444_v11 = vsel %vm175_vm2, %v435_v8, 0.0  ;;  %v446_v14 = vsel %vm177_vm12, %v442_v13, 0.0  ;;  %vm496_vm2 = vcmask 392192   ;;  %v429_v25 = vsel %vm139_vm4, %v419_v12, 0.0  ;;  %v769_v5 = vld [vmem:[#allocation2 + $0x98] sm:$0xff] }
 0x185   :  { %465 = vrot.lane.b32.xlu1 %v444_v11, %s1507_s5  ;;  %467 = vrot.lane.b32.xlu0 %v437_v9, %s1507_s5  ;;  %v1362_v54 = vpack.c.bf16 %v759_v51, %v758_v50  ;;  %v1382_v6 = vpack.c.bf16 %v769_v5, %v768_v4  ;;  %v700_v7 = vand.u32 7, %v1544_v2  ;;  %v693_v8 = vand.u32 7, %v1541_v1  ;;  %v897_v51 = vld [vmem:[#allocation2 + $0x100] sm:$0xff]  ;;  %v907_v5 = vld [vmem:[#allocation2 + $0x150] sm:$0xff] }
 0x186   :  { %vm755_vm12 = vcmask 523264  }
 0x187   :  { %v1689_v9 = vadd.s32 1, %v700_v7 }
 0x189   :  { %469 = vrot.lane.b32.xlu1 %v446_v14, %s1507_s5  ;;  %vm734_vm4 = vcmp.lt.s32.totalorder %v1689_v9, 8 }
 0x1e5   :  { %v450_v53 = vpop.permute.xlu1 %449 }
 0x1e6   :  { %v448_v16 = vpop.permute.xlu0 %447  ;;  %v477_v26 = vsel %vm475_vm8, %v417_v59, %v450_v53  ;;  %v1370_v59 = vpack.c.bf16 %v763_v58, %v762_v57  ;;  %v1708_v53 = vadd.s32 4294967295, %v700_v7  ;;  %v901_v58 = vld [vmem:[#allocation2 + $0x120] sm:$0xff] }
 0x1e7   :  { %v476_v20 = vsel %vm475_vm8, %v427_v15, %v448_v16 }
 0x1e8   :  { %vm716_vm11 = vcmp.ge.s32.totalorder %v1708_v53, 0 }
 0x1ea   :  { %v464_v21 = vpop.permute.xlu0 %463 }
 0x1eb   :  { %v481_v22 = vsel %vm480_vm9, %v476_v20, %v464_v21 }
 0x1ec   :  { %1266 = vmatprep.mubr.msk.f32.mxu1 %vm496_vm2, %v481_v22  ;;  %v1706_v22 = vadd.s32 4294967295, %v693_v8 }
 0x1ee   :  { %vm715_vm10 = vcmp.ge.s32.totalorder %v1706_v22, 0  ;;  %v1190_v22 = vld [vmem:[#allocation2 + $0x1d0] ss:$0 sm:$0xff] }
 0x1f2   :  { %v454_v23 = vpop.permute.xlu1 %453 }
 0x1f3   :  { %v452_v24 = vpop.permute.xlu0 %451  ;;  %v479_v31 = vsel %vm475_vm8, %v421_v10, %v454_v23  ;;  %v1691_v10 = vadd.s32 1, %v693_v8  ;;  %v1187_v8 = vld [vmem:[#allocation2 + $0x1c8] ss:$0 sm:$0xff] }
 0x1f4   :  { %v478_v27 = vsel %vm475_vm8, %v429_v25, %v452_v24 }
 0x1f5   :  { %vm733_vm5 = vcmp.lt.s32.totalorder %v1691_v10, 8 }
 0x1f7   :  { %v466_v19 = vpop.permute.xlu1 %465  ;;  %v468_v28 = vpop.permute.xlu0 %467 }
 0x1f8   :  { %v482_v29 = vsel %vm480_vm9, %v477_v26, %v466_v19  ;;  %v483_v30 = vsel %vm480_vm9, %v478_v27, %v468_v28 }
 0x1f9   :  { %1267 = vmatmul.mubr.msk.f32.vlgmr.msra.gmra.mrb[0].mxu1 %vm496_vm2, %v482_v29 }
 0x1fa   :  { %1269 = vmatprep.mubr.msk.f32.mxu1 %vm496_vm2, %v483_v30 }
 0x1fb   :  { %v470_v32 = vpop.permute.xlu1 %469 }
 0x1fc   :  { %v484_v18 = vsel %vm480_vm9, %v479_v31, %v470_v32 }
 0x1fd   :  { %1270 = vmatmul.mubr.msk.f32.gmra.mrb[2].mxu1 %vm496_vm2, %v484_v18  ;;  %v885_v18 = vld [vmem:[#allocation2 + $0xa0] sm:$0xff] }
 0x2cc   :  { %v1268_v35 = vpop.f32.mrb[0].mxu1 }
 0x2cd   :  { %v581_v36 = vadd.f32 %v1268_v35, %v1180_v34  ;;  %v575_v37 = vpop.f32.mrb[1].mxu1  ;;  %v1509_v35 = vmov 0.0|0.0  }
 0x2ce   :  { %v576_v38 = vadd.f32 %v1180_v34, %v575_v37  ;;  %1386 = vmatprep.subr.bf16.mxu1 %v1509_v35  ;;  %v888_v37 = vld [vmem:[#allocation2 + $0xb8] sm:$0xff] }
 0x2cf   :  { %v595_v39 = vmax.f32 %v581_v36, 0.0  ;;  %v1387_v36 = vpack.c.bf16 %v886_v33, %v885_v18 }
 0x2d0   :  { %v594_v40 = vmax.f32 %v576_v38, 0.0  ;;  %v1271_v41 = vpop.f32.mrb[2].mxu1 }
 0x2d1   :  { %v591_v42 = vadd.f32 %v1271_v41, %v1180_v34  ;;  %v585_v43 = vpop.f32.mrb[3].mxu1  ;;  %1388 = vmatpush1.bf16.msra.mxu1 %v1387_v36 }
 0x2d2   :  { %v1354_v44 = vpack.c.bf16 %v595_v39, %v594_v40  ;;  %v586_v45 = vadd.f32 %v1180_v34, %v585_v43  ;;  %v887_v34 = vld [vmem:[#allocation2 + $0xb0] sm:$0xff]  ;;  %1389 = vmatprep.subr.bf16.mxu1 %v1509_v35  ;;  %v889_v39 = vld [vmem:[#allocation2 + $0xc0] sm:$0xff]  ;;  %v890_v40 = vld [vmem:[#allocation2 + $0xc8] sm:$0xff] }
 0x2d3   :  { %v597_v46 = vmax.f32 %v591_v42, 0.0  ;;  %v1390_v38 = vpack.c.bf16 %v888_v37, %v887_v34  ;;  %v1393_v41 = vpack.c.bf16 %v890_v40, %v889_v39  ;;  %v891_v42 = vld [vmem:[#allocation2 + $0xd0] sm:$0xff]  ;;  %v892_v43 = vld [vmem:[#allocation2 + $0xd8] sm:$0xff]  ;;  %v1071_v40 = vld [vmem:[#allocation2 + $0x160] sm:$0xff] }
 0x2d4   :  { %v596_v47 = vmax.f32 %v586_v45, 0.0  ;;  %1355 = vmatprep.subr.bf16.mxu0 %v1354_v44  ;;  %v893_v45 = vld [vmem:[#allocation2 + $0xe0] sm:$0xff] }
 0x2d5   :  { %1357 = vmatpush3.bf16.msra.mxu0 %v1354_v44  ;;  %1391 = vmatpush1.bf16.msra.mxu1 %v1390_v38  ;;  %v1396_v44 = vpack.c.bf16 %v892_v43, %v891_v42  ;;  %v997_v42 = vld [vmem:[#allocation2 + $0x1b0] sm:$0x3] }
 0x2d6   :  { %v1358_v48 = vpack.c.bf16 %v597_v46, %v596_v47  ;;  %1392 = vmatprep.subr.bf16.mxu1 %v1509_v35  ;;  %v894_v46 = vld [vmem:[#allocation2 + $0xe8] sm:$0xff] }
 0x2d7   :  { %v1399_v47 = vpack.c.bf16 %v894_v46, %v893_v45  ;;  %v1074_v45 = vld [vmem:[#allocation2 + $0x178] sm:$0xff] }
 0x2d8   :  { %1359 = vmatprep.subr.bf16.mxu0 %v1358_v48 }
 0x2d9   :  { %1361 = vmatpush3.bf16.msra.mxu0 %v1358_v48  ;;  %1394 = vmatpush1.bf16.msra.mxu1 %v1393_v41  ;;  %v895_v48 = vld [vmem:[#allocation2 + $0xf0] sm:$0xff]  ;;  %v1072_v41 = vld [vmem:[#allocation2 + $0x168] sm:$0xff] }
 0x2da   :  { %1363 = vmatprep.subr.bf16.mxu0 %v1362_v54  ;;  %1395 = vmatprep.subr.bf16.mxu1 %v1509_v35  ;;  %v1426_v43 = vpack.c.bf16 %v1072_v41, %v1071_v40 }
 0x2dc   :  { %1281 = vmatmul.mubr.msk.f32.vlgmr.msra.gmra.mrb[4].mxu0 %vm480_vm9, %v599_v49  ;;  %v896_v49 = vld [vmem:[#allocation2 + $0xf8] sm:$0xff] }
 0x2dd   :  { %1365 = vmatpush3.bf16.msra.mxu0 %v1362_v54  ;;  %1397 = vmatpush1.bf16.msra.mxu1 %v1396_v44  ;;  %v1402_v50 = vpack.c.bf16 %v896_v49, %v895_v48  ;;  %v1405_v54 = vpack.c.bf16 %v898_v52, %v897_v51  ;;  %v1073_v44 = vld [vmem:[#allocation2 + $0x170] sm:$0xff]  ;;  %v1076_v48 = vld [vmem:[#allocation2 + $0x188] sm:$0xff]  ;;  %v1078_v51 = vld [vmem:[#allocation2 + $0x198] sm:$0xff] }
 0x2de   :  { %1367 = vmatprep.subr.bf16.mxu0 %v1366_v56  ;;  %1398 = vmatprep.subr.bf16.mxu1 %v1509_v35  ;;  %v1429_v46 = vpack.c.bf16 %v1074_v45, %v1073_v44 }
 0x2e1   :  { %1369 = vmatpush3.bf16.msra.mxu0 %v1366_v56  ;;  %1400 = vmatpush1.bf16.msra.mxu1 %v1399_v47  ;;  %v900_v56 = vld [vmem:[#allocation2 + $0x118] sm:$0xff]  ;;  %v1075_v47 = vld [vmem:[#allocation2 + $0x180] sm:$0xff] }
 0x2e2   :  { %1371 = vmatprep.subr.bf16.mxu0 %v1370_v59  ;;  %1401 = vmatprep.subr.bf16.mxu1 %v1509_v35  ;;  %v1408_v57 = vpack.c.bf16 %v900_v56, %v899_v55  ;;  %v1432_v49 = vpack.c.bf16 %v1076_v48, %v1075_v47  ;;  %v1194_v56 = vld [vmem:[#allocation2 + $0x1d8] ss:$0 sm:$0xff] }
 0x2e5   :  { %1373 = vmatpush3.bf16.msra.mxu0 %v1370_v59  ;;  %1403 = vmatpush1.bf16.msra.mxu1 %v1402_v50  ;;  %v902_v59 = vld [vmem:[#allocation2 + $0x128] sm:$0xff]  ;;  %v1077_v50 = vld [vmem:[#allocation2 + $0x190] sm:$0xff] }
 0x2e6   :  { %1375 = vmatprep.subr.bf16.mxu0 %v1374_v62  ;;  %1404 = vmatprep.subr.bf16.mxu1 %v1509_v35  ;;  %v1411_v60 = vpack.c.bf16 %v902_v59, %v901_v58  ;;  %v1435_v52 = vpack.c.bf16 %v1078_v51, %v1077_v50 }
 0x2e9   :  { %1377 = vmatpush3.bf16.msra.mxu0 %v1374_v62  ;;  %1406 = vmatpush1.bf16.msra.mxu1 %v1405_v54  ;;  %v904_v62 = vld [vmem:[#allocation2 + $0x138] sm:$0xff] }
 0x2ea   :  { %1379 = vmatprep.subr.bf16.mxu0 %v1378_v3  ;;  %1407 = vmatprep.subr.bf16.mxu1 %v1509_v35  ;;  %v1414_v63 = vpack.c.bf16 %v904_v62, %v903_v61 }
 0x2ed   :  { %1381 = vmatpush3.bf16.msra.mxu0 %v1378_v3  ;;  %1409 = vmatpush1.bf16.msra.mxu1 %v1408_v57  ;;  %v906_v3 = vld [vmem:[#allocation2 + $0x148] sm:$0xff] }
 0x2ee   :  { %1383 = vmatprep.subr.bf16.mxu0 %v1382_v6  ;;  %1410 = vmatprep.subr.bf16.mxu1 %v1509_v35  ;;  %v1417_v4 = vpack.c.bf16 %v906_v3, %v905_v0 }
 0x2f1   :  { %1385 = vmatpush3.bf16.msra.mxu0 %v1382_v6  ;;  %1412 = vmatpush1.bf16.msra.mxu1 %v1411_v60  ;;  %v908_v6 = vld [vmem:[#allocation2 + $0x158] sm:$0xff] }
 0x2f2   :  { %1422 = vmatprep.subr.bf16.mxu0 %v1509_v35  ;;  %1413 = vmatprep.subr.bf16.mxu1 %v1509_v35  ;;  %v1420_v7 = vpack.c.bf16 %v908_v6, %v907_v5 }
 0x2f5   :  { %1415 = vmatpush1.bf16.msra.mxu1 %v1414_v63 }
 0x2f6   :  { %1416 = vmatprep.subr.bf16.mxu1 %v1509_v35 }
 0x2f9   :  { %1418 = vmatpush1.bf16.msra.mxu1 %v1417_v4 }
 0x2fa   :  { %1419 = vmatprep.subr.bf16.mxu1 %v1509_v35 }
 0x2fd   :  { %1421 = vmatpush1.bf16.msra.mxu1 %v1420_v7 }
 0x3af   :  { %v1282_v11 = vpop.f32.mrb[4].mxu0 }
 0x3b0   :  { %v684_v12 = vrot.slane %v1282_v11, 7  ;;  %v724_v13 = vrot.slane %v1282_v11, 1  ;;  %741 = vrot.lane.b32.xlu1 %v1282_v11, %s1507_s5  ;;  %v672_v14 = vpop.f32.mrb[5].mxu0 }
 0x3b1   :  { %v683_v16 = vrot.slane %v672_v14, 7  ;;  %v723_v17 = vrot.slane %v672_v14, 1  ;;  %739 = vrot.lane.b32.xlu0 %v672_v14, %s1507_s5 }
 0x3b2   :  { %v728_v1 = vsel %vm153_vm1, %v724_v13, 0.0 }
 0x3b3   :  { %v738_v2 = vsel %vm734_vm4, %v728_v1, 0.0  ;;  %v725_v15 = vsel %vm153_vm1, %v723_v17, %v724_v13  ;;  %v685_v20 = vsel %vm120_vm0, %v683_v16, %v684_v12  ;;  %v688_v25 = vsel %vm120_vm0, 0.0, %v683_v16 }
 0x3b4   :  { %749 = vrot.lane.b32.xlu1 %v738_v2, %s1508_s6  ;;  %v737_v21 = vsel %vm733_vm5, %v725_v15, 0.0  ;;  %v721_v26 = vsel %vm715_vm10, %v688_v25, 0.0  ;;  %v722_v19 = vsel %vm716_vm11, %v685_v20, 0.0 }
 0x3b5   :  { %747 = vrot.lane.b32.xlu0 %v737_v21, %s1508_s6 }
 0x422   :  { %v742_v23 = vpop.permute.xlu1 %741 }
 0x423   :  { %v740_v24 = vpop.permute.xlu0 %739  ;;  %v754_v30 = vsel %vm480_vm9, %v722_v19, %v742_v23 }
 0x424   :  { %v753_v28 = vsel %vm480_vm9, %v721_v26, %v740_v24 }
 0x426   :  { %v750_v27 = vpop.permute.xlu1 %749 }
 0x427   :  { %v748_v29 = vpop.permute.xlu0 %747  ;;  %v757_v32 = vsel %vm755_vm12, %v754_v30, %v750_v27 }
 0x428   :  { %v756_v31 = vsel %vm755_vm12, %v753_v28, %v748_v29 }
 0x429   :  { %1307 = vmatprep.mubr.msk.f32.mxu0 %vm775_vm13, %v756_v31 }
 0x42a   :  { %1308 = vmatmul.mubr.msk.f32.vlgmr.msra.gmra.mrb[6].mxu0 %vm775_vm13, %v757_v32  ;;  %v1511_v32 = vmov 0.0  }
 0x4fd   :  { %v1309_v11 = vpop.f32.mrb[6].mxu0 }
 0x4fe   :  { %v854_v12 = vadd.f32 %v1309_v11, %v1187_v8  ;;  %v848_v13 = vpop.f32.mrb[7].mxu0 }
 0x4ff   :  { %v849_v14 = vadd.f32 %v1187_v8, %v848_v13 }
 0x500   :  { %v858_v16 = vmax.f32 %v854_v12, 0.0 }
 0x501   :  { %v857_v17 = vmax.f32 %v849_v14, 0.0 }
 0x502   :  { %v862_v1 = vrot.slane %v858_v16, 7  ;;  %v870_v2 = vrot.slane %v858_v16, 1  ;;  %879 = vrot.lane.b32.xlu1 %v858_v16, %s1508_s6 }
 0x503   :  { %v861_v15 = vrot.slane %v857_v17, 7  ;;  %v869_v20 = vrot.slane %v857_v17, 1  ;;  %877 = vrot.lane.b32.xlu0 %v857_v17, %s1508_s6 }
 0x504   :  { %v874_v26 = vsel %vm153_vm1, %v870_v2, 0.0 }
 0x505   :  { %v871_v21 = vsel %vm153_vm1, %v869_v20, %v870_v2  ;;  %v863_v23 = vsel %vm120_vm0, %v861_v15, %v862_v1  ;;  %v866_v25 = vsel %vm120_vm0, 0.0, %v861_v15  ;;  %v876_v30 = vsel %vm734_vm4, %v874_v26, 0.0 }
 0x506   :  { %v875_v24 = vsel %vm733_vm5, %v871_v21, 0.0  ;;  %v867_v19 = vsel %vm715_vm10, %v866_v25, 0.0  ;;  %v868_v10 = vsel %vm716_vm11, %v863_v23, 0.0  ;;  %vm1510_vm0 = vmmov 0  }
 0x507   :  { %1191 = vmatprep.mubr.msk.f32.mxu1 %vm755_vm12, %v875_v24  ;;  %1314 = vmatprep.mubr.msk.f32.mxu0 %vm1510_vm0, %v1511_v32  ;;  %vm1157_vm1 = vcmask 9216  }
 0x574   :  { %v880_v29 = vpop.permute.xlu1 %879 }
 0x575   :  { %v878_v27 = vpop.permute.xlu0 %877  ;;  %v884_v31 = vsel %vm755_vm12, %v868_v10, %v880_v29 }
 0x576   :  { %v883_v28 = vsel %vm755_vm12, %v867_v19, %v878_v27 }
 0x577   :  { %985 = vmatmul.mubr.f32.vlgmr.msra.gmra.mrb[4].mxu1 %v883_v28 }
 0x578   :  { %1192 = vmatprep.mubr.msk.f32.mxu1 %vm755_vm12, %v876_v30 }
 0x57b   :  { %990 = vmatmul.mubr.f32.gmra.mrb[6].mxu1 %v884_v31 }
 0x64a   :  { %v986_v18 = vpop.f32.mrb[4].mxu1 }
 0x64b   :  { %v988_v33 = vpop.f32.mrb[5].mxu1  ;;  %v987_v34 = vadd.f32 %v1190_v22, %v986_v18 }
 0x64d   :  { %v995_v38 = vmax.f32 %v987_v34, 0.0 }
 0x64e   :  { %v991_v36 = vpop.f32.mrb[6].mxu1 }
 0x64f   :  { %v992_v37 = vadd.f32 %v1190_v22, %v991_v36  ;;  %v993_v9 = vpop.f32.mrb[7].mxu1 }
 0x651   :  { %v996_v39 = vmax.f32 %v992_v37, 0.0 }
 0x653   :  { %v1423_v53 = vpack.c.bf16 %v996_v39, %v995_v38 }
 0x655   :  { %1424 = vmatpush3.bf16.msra.mxu0 %v1423_v53 }
 0x656   :  { %1425 = vmatprep.subr.bf16.mxu0 %v1509_v35 }
 0x658   :  { %1315 = vmatmul.mubr.msk.f32.vlgmr.msra.gmra.mrb[8].mxu0 %vm475_vm8, %v997_v42 }
 0x659   :  { %1427 = vmatpush3.bf16.msra.mxu0 %v1426_v43  ;;  %1333 = vmatprep.mubr.msk.f32.mxu0 %vm1510_vm0, %v1511_v32 }
 0x65a   :  { %1428 = vmatprep.subr.bf16.mxu0 %v1509_v35 }
 0x65d   :  { %1430 = vmatpush3.bf16.msra.mxu0 %v1429_v46 }
 0x65e   :  { %1431 = vmatprep.subr.bf16.mxu0 %v1509_v35 }
 0x661   :  { %1433 = vmatpush3.bf16.msra.mxu0 %v1432_v49 }
 0x662   :  { %1434 = vmatprep.subr.bf16.mxu0 %v1509_v35 }
 0x665   :  { %1436 = vmatpush3.bf16.msra.mxu0 %v1435_v52 }
 0x72b   :  { %v1067_v54 = vpop.f32.mrb[8].mxu0 }
 0x72c   :  { %v1316_v55 = vpop.f32.mrb[9].mxu0  ;;  %1334 = vmatmul.mubr.msk.f32.vlgmr.msra.gmra.mrb[10].mxu0 %vm755_vm12, %v1067_v54 }
 0x7ff   :  { %v1153_v57 = vpop.f32.mrb[10].mxu0 }
 0x800   :  { %v1154_v58 = vadd.f32 %v1194_v56, %v1153_v57  ;;  %v1335_v59 = vpop.f32.mrb[11].mxu0 }
 0x802   :  { %1158 = vst.msk [vmem:[#allocation5] sm:$0x3] %vm1157_vm1, %v1154_v58 }
 0x803   :  { %1484 = shalt.err (!%p1481_p12)
}
 0x804   :  { %s1485_s12 = scalar_lea.hbm %s1774_s2, 32 }
 0x805   :  { %p1486_p13 = scmp.ne.s32.totalorder %s1774_s2, %s1485_s12  ;;  %p1489_p0 = scmp.lt.u32.totalorder %s1485_s12, %s1774_s2 }
 0x807   :  { %p1491_p1 = pnand %p1489_p0, %p1486_p13 }
 0x809   :  { %1494 = shalt.err (!%p1491_p1)
}
 0x80a   :  { %1168 = dma.vmem_to_hbm [thread:$0]  %s1166_s8, 32, %s1774_s2, [#allocation4]  }
 0x80b   :  { %1497 = dma.done.wait [#allocation4], 32  }
 0x80c   :  { %1498 = vsyncadd [#allocation4], 4294967264 }
 0x80d   :  { %1172 = vsyncpa [#allocation3], 1 }
 0x80e   :  { %1173 = vsyncpa [#allocation4], 1 }

</bundles_post_ra>
